<compile_context>
chip_gen: v6e
topology: v6e:2x2x1
jax: 0.10.0
libtpu: 0.0.40
codegen_flags: <defaults>
</compile_context>

<pallas_src>
import functools

import jax
import jax.numpy as jnp
from jax.experimental import pallas as pl
from jax.experimental.pallas import tpu as pltpu


def _round_up(x, m):
    return (x + m - 1) // m * m


def _cdiv(a, b):
    return (a + b - 1) // b


# ---------------------------------------------------------------------------
# Kernel bodies
# ---------------------------------------------------------------------------

def _conv2d_native_kernel(w_ref, x_ref, o_ref, *, K, kh, kw):
    """Native-layout path (small batch).

    w_ref: (K*kh*kw,)      f32 SMEM scalar tap table
    x_ref: (TB, H, W)      f32 VMEM (H on sublanes, W on lanes)
    o_ref: (TB, K, OH, OW) f32 VMEM
    """
    TB, H, W = x_ref.shape
    OH = H - kh + 1
    OW = W - kw + 1
    # Static loop over images in this block bounds the live accumulators to
    # K * ceil(OH/8) * ceil(OW/128) vregs per image.
    for b in range(TB):
        accs = [None] * K
        for dh in range(kh):
            for dw in range(kw):
                # One shifted-patch load, reused across all K channels.
                patch = x_ref[b, pl.ds(dh, OH), pl.ds(dw, OW)]        # (OH, OW)
                for k in range(K):
                    tap = w_ref[k * (kh * kw) + dh * kw + dw]         # SMEM scalar
                    term = tap * patch
                    accs[k] = term if accs[k] is None else accs[k] + term
        for k in range(K):
            o_ref[b, k, :, :] = accs[k].astype(o_ref.dtype)


def _conv2d_lanes_kernel(w_ref, x_ref, o_ref, *, K, kh, kw, oh_tile):
    """Lane-dense path (large batch: batch on the 128-wide lane axis).

    w_ref: (K*kh*kw,)      f32 SMEM
    x_ref: (H, W, TB)      f32 VMEM
    o_ref: (K, OH, OW, TB) f32 VMEM
    """
    H, W, TB = x_ref.shape
    _, OH, OW, _ = o_ref.shape
    # Sub-tile OH so the K live accumulators stay well under 64 vregs.
    for oh0 in range(0, OH, oh_tile):
        toh = min(oh_tile, OH - oh0)
        accs = [None] * K
        for dh in range(kh):
            for dw in range(kw):
                patch = x_ref[pl.ds(oh0 + dh, toh), pl.ds(dw, OW), :]  # (toh, OW, TB)
                for k in range(K):
                    tap = w_ref[k * (kh * kw) + dh * kw + dw]
                    term = tap * patch
                    accs[k] = term if accs[k] is None else accs[k] + term
        for k in range(K):
            o_ref[k, pl.ds(oh0, toh), :, :] = accs[k].astype(o_ref.dtype)


# ---------------------------------------------------------------------------
# Tiling helpers (VMEM-budget checked in both paths)
# ---------------------------------------------------------------------------

def _native_batch_tile(B, H, W, K, OH, OW, budget_bytes, max_unroll=8):
    def blocks_bytes(t):
        x_blk = t * _round_up(H, 8) * _round_up(W, 128) * 4
        o_blk = t * K * _round_up(OH, 8) * _round_up(OW, 128) * 4
        return 2 * (x_blk + o_blk)                 # 2x: BlockSpec double-buffering
    tb = min(max_unroll, max(1, _cdiv(B, 2)))      # >= 2 grid steps (v7x dual TC)
    while tb > 1 and blocks_bytes(tb) > budget_bytes:
        tb = _cdiv(tb, 2)
    return tb


def _lane_batch_tile(B, H, W, K, OH, OW, budget_bytes):
    def blocks_bytes(t):
        x_blk = H * _round_up(W, 8) * _round_up(t, 128) * 4
        o_blk = K * OH * _round_up(OW, 8) * _round_up(t, 128) * 4
        return 2 * (x_blk + o_blk)
    # Cap the tile so the parallel grid keeps >= 2 steps whenever B allows it.
    tb_cap = _round_up(max(128, _cdiv(B, 2)), 128) if B >= 256 else 128
    tb = 128
    while tb + 128 <= tb_cap and blocks_bytes(tb + 128) <= budget_bytes:
        tb += 128
    return tb


# ---------------------------------------------------------------------------
# pallas_call wrappers
# ---------------------------------------------------------------------------

def _conv2d_native_path(x, w_flat, K, kh, kw, budget_bytes):
    B, H, W = x.shape
    OH, OW = H - kh + 1, W - kw + 1
    tb = _native_batch_tile(B, H, W, K, OH, OW, budget_bytes)
    grid = (_cdiv(B, tb),)

    x_blk = tb * _round_up(H, 8) * _round_up(W, 128) * 4
    o_blk = tb * K * _round_up(OH, 8) * _round_up(OW, 128) * 4
    vmem_limit = max(2 * (x_blk + o_blk) + (4 << 20), 32 << 20)

    kernel = functools.partial(_conv2d_native_kernel, K=K, kh=kh, kw=kw)
    return pl.pallas_call(
        kernel,
        out_shape=jax.ShapeDtypeStruct((B, K, OH, OW), x.dtype),
        grid=grid,
        in_specs=[
            # Tiny weight table: whole array resident in SMEM, taps read as scalars.
            pl.BlockSpec(memory_space=pltpu.MemorySpace.SMEM),
            # Native-layout image tile: no wrapper-side transpose.
            pl.BlockSpec((tb, H, W), lambda b: (b, 0, 0)),
        ],
        # All K channels in one block -> one larger contiguous writeback per step.
        out_specs=pl.BlockSpec((tb, K, OH, OW), lambda b: (b, 0, 0, 0)),
        compiler_params=pltpu.CompilerParams(
            dimension_semantics=("parallel",),
            vmem_limit_bytes=vmem_limit,
        ),
    )(w_flat, x)


def _conv2d_lane_path(x, w_flat, K, kh, kw, budget_bytes):
    B, H, W = x.shape
    OH, OW = H - kh + 1, W - kw + 1
    # Layout plumbing for the large-batch case; keep activations in (H, W, B)
    # across layers to pay this transpose once per network, not per layer.
    x_t = jnp.transpose(x, (1, 2, 0))                       # (H, W, B)

    tb = _lane_batch_tile(B, H, W, K, OH, OW, budget_bytes)
    grid = (_cdiv(B, tb),)
    lane_cols = max(1, tb // 128)
    oh_tile = max(1, min(OH, 32 // max(1, K * _cdiv(OW, 8) * lane_cols)))

    x_blk = H * _round_up(W, 8) * _round_up(tb, 128) * 4
    o_blk = K * OH * _round_up(OW, 8) * _round_up(tb, 128) * 4
    vmem_limit = max(2 * (x_blk + o_blk) + (4 << 20), 32 << 20)

    kernel = functools.partial(_conv2d_lanes_kernel, K=K, kh=kh, kw=kw,
                               oh_tile=oh_tile)
    out_t = pl.pallas_call(
        kernel,
        out_shape=jax.ShapeDtypeStruct((K, OH, OW, B), x.dtype),
        grid=grid,
        in_specs=[
            pl.BlockSpec(memory_space=pltpu.MemorySpace.SMEM),
            pl.BlockSpec((H, W, tb), lambda b: (0, 0, b)),
        ],
        out_specs=pl.BlockSpec((K, OH, OW, tb), lambda b: (0, 0, 0, b)),
        compiler_params=pltpu.CompilerParams(
            dimension_semantics=("parallel",),
            vmem_limit_bytes=vmem_limit,
        ),
    )(w_flat, x_t)
    return jnp.transpose(out_t, (3, 0, 1, 2))               # (B, K, OH, OW)


@functools.partial(jax.jit,
                   static_argnames=("vmem_budget_bytes", "lane_batch_threshold"))
def conv2d_forward(x, kernels, *, vmem_budget_bytes=48 * 1024 * 1024,
                   lane_batch_threshold=128):
    """x: (B, H, W), kernels: (K, kh, kw) -> (B, K, H-kh+1, W-kw+1)."""
    B, H, W = x.shape
    K, kh, kw = kernels.shape
    w_flat = kernels.reshape(K * kh * kw)                   # scalar tap table (SMEM)
    if B < lane_batch_threshold:
        # Small batch: native layout end-to-end (no transposes, better lanes).
        return _conv2d_native_path(x, w_flat, K, kh, kw, vmem_budget_bytes)
    # Large batch: batch fills the 128-wide lane axis.
    return _conv2d_lane_path(x, w_flat, K, kh, kw, vmem_budget_bytes)


# ---------------------------------------------------------------------------
# Params init + pure-JAX reference + self-test
# ---------------------------------------------------------------------------

def init_conv2d_params(key, kernel_num, kernel_size):
    # nn.init.normal_(kernels, mean=0.0, std=1.0 / kernel_size**2)
    std = 1.0 / (kernel_size ** 2)
    return std * jax.random.normal(
        key, (kernel_num, kernel_size, kernel_size), dtype=jnp.float32
    )


def _reference_conv2d(x, kernels):
    # Pure-JAX reference mirroring the PyTorch loop (valid cross-correlation).
    B, H, W = x.shape
    K, kh, kw = kernels.shape
    OH, OW = H - kh + 1, W - kw + 1
    out = jnp.zeros((B, K, OH, OW), jnp.float32)
    for dh in range(kh):
        for dw in range(kw):
            patch = x[:, dh:dh + OH, dw:dw + OW]
            out = out + patch[:, None, :, :] * kernels[:, dh, dw][None, :, None, None]
    return out


if __name__ == "__main__":
    key = jax.random.PRNGKey(0)
    k_x, k_w = jax.random.split(key)

    batch, image_hw = 2, 16
    kernel_num, kernel_size = 4, 3

    x = jax.random.normal(k_x, (batch, image_hw, image_hw), dtype=jnp.float32)
    kernels = init_conv2d_params(k_w, kernel_num, kernel_size)

    out = conv2d_forward(x, kernels)
    out = jax.block_until_ready(out)

    ref = _reference_conv2d(x, kernels)
    assert out.shape == (batch, kernel_num,
                         image_hw - kernel_size + 1,
                         image_hw - kernel_size + 1)
    assert jnp.allclose(out, ref, atol=1e-5, rtol=1e-5)

    print("KERNEL_OK")
</pallas_src>

<mosaic_0001>
module attributes {stable_mosaic.version = 11 : i64} {
  func.func @_conv2d_native_kernel(%arg0: i32, %arg1: memref<36xf32, #tpu.memory_space<smem>>, %arg2: memref<1x16x16xf32, #tpu.memory_space<vmem>>, %arg3: memref<1x4x14x14xf32, #tpu.memory_space<vmem>>) attributes {dimension_semantics = [#tpu.dimension_semantics<parallel>], iteration_bounds = array<i64: 2>, scalar_prefetch = 0 : i64, scratch_operands = 0 : i64, tpu.core_type = #tpu.core_type<tc>, window_params = [{transform_indices = @transform_0, window_bounds = array<i64: 36>}, {transform_indices = @transform_1, window_bounds = array<i64: 1, 16, 16>}, {transform_indices = @transform_2, window_bounds = array<i64: 1, 4, 14, 14>}]} {
    %c0 = arith.constant 0 : index
    %c0_0 = arith.constant 0 : index
    %c0_1 = arith.constant 0 : index
    %0 = vector.load %arg2[%c0, %c0_0, %c0_1] : memref<1x16x16xf32, #tpu.memory_space<vmem>>, vector<1x14x14xf32>
    %1 = vector.shape_cast %0 : vector<1x14x14xf32> to vector<14x14xf32>
    %c0_2 = arith.constant 0 : index
    %2 = memref.load %arg1[%c0_2] : memref<36xf32, #tpu.memory_space<smem>>
    %3 = vector.broadcast %2 : f32 to vector<14x14xf32>
    %4 = arith.mulf %3, %1 : vector<14x14xf32>
    %c9 = arith.constant 9 : index
    %5 = memref.load %arg1[%c9] : memref<36xf32, #tpu.memory_space<smem>>
    %6 = vector.broadcast %5 : f32 to vector<14x14xf32>
    %7 = arith.mulf %6, %1 : vector<14x14xf32>
    %c18 = arith.constant 18 : index
    %8 = memref.load %arg1[%c18] : memref<36xf32, #tpu.memory_space<smem>>
    %9 = vector.broadcast %8 : f32 to vector<14x14xf32>
    %10 = arith.mulf %9, %1 : vector<14x14xf32>
    %c27 = arith.constant 27 : index
    %11 = memref.load %arg1[%c27] : memref<36xf32, #tpu.memory_space<smem>>
    %12 = vector.broadcast %11 : f32 to vector<14x14xf32>
    %13 = arith.mulf %12, %1 : vector<14x14xf32>
    %c0_3 = arith.constant 0 : index
    %c0_4 = arith.constant 0 : index
    %c1 = arith.constant 1 : index
    %14 = vector.load %arg2[%c0_3, %c0_4, %c1] : memref<1x16x16xf32, #tpu.memory_space<vmem>>, vector<1x14x14xf32>
    %15 = vector.shape_cast %14 : vector<1x14x14xf32> to vector<14x14xf32>
    %c1_5 = arith.constant 1 : index
    %16 = memref.load %arg1[%c1_5] : memref<36xf32, #tpu.memory_space<smem>>
    %17 = vector.broadcast %16 : f32 to vector<14x14xf32>
    %18 = arith.mulf %17, %15 : vector<14x14xf32>
    %19 = arith.addf %4, %18 : vector<14x14xf32>
    %c10 = arith.constant 10 : index
    %20 = memref.load %arg1[%c10] : memref<36xf32, #tpu.memory_space<smem>>
    %21 = vector.broadcast %20 : f32 to vector<14x14xf32>
    %22 = arith.mulf %21, %15 : vector<14x14xf32>
    %23 = arith.addf %7, %22 : vector<14x14xf32>
    %c19 = arith.constant 19 : index
    %24 = memref.load %arg1[%c19] : memref<36xf32, #tpu.memory_space<smem>>
    %25 = vector.broadcast %24 : f32 to vector<14x14xf32>
    %26 = arith.mulf %25, %15 : vector<14x14xf32>
    %27 = arith.addf %10, %26 : vector<14x14xf32>
    %c28 = arith.constant 28 : index
    %28 = memref.load %arg1[%c28] : memref<36xf32, #tpu.memory_space<smem>>
    %29 = vector.broadcast %28 : f32 to vector<14x14xf32>
    %30 = arith.mulf %29, %15 : vector<14x14xf32>
    %31 = arith.addf %13, %30 : vector<14x14xf32>
    %c0_6 = arith.constant 0 : index
    %c0_7 = arith.constant 0 : index
    %c2 = arith.constant 2 : index
    %32 = vector.load %arg2[%c0_6, %c0_7, %c2] : memref<1x16x16xf32, #tpu.memory_space<vmem>>, vector<1x14x14xf32>
    %33 = vector.shape_cast %32 : vector<1x14x14xf32> to vector<14x14xf32>
    %c2_8 = arith.constant 2 : index
    %34 = memref.load %arg1[%c2_8] : memref<36xf32, #tpu.memory_space<smem>>
    %35 = vector.broadcast %34 : f32 to vector<14x14xf32>
    %36 = arith.mulf %35, %33 : vector<14x14xf32>
    %37 = arith.addf %19, %36 : vector<14x14xf32>
    %c11 = arith.constant 11 : index
    %38 = memref.load %arg1[%c11] : memref<36xf32, #tpu.memory_space<smem>>
    %39 = vector.broadcast %38 : f32 to vector<14x14xf32>
    %40 = arith.mulf %39, %33 : vector<14x14xf32>
    %41 = arith.addf %23, %40 : vector<14x14xf32>
    %c20 = arith.constant 20 : index
    %42 = memref.load %arg1[%c20] : memref<36xf32, #tpu.memory_space<smem>>
    %43 = vector.broadcast %42 : f32 to vector<14x14xf32>
    %44 = arith.mulf %43, %33 : vector<14x14xf32>
    %45 = arith.addf %27, %44 : vector<14x14xf32>
    %c29 = arith.constant 29 : index
    %46 = memref.load %arg1[%c29] : memref<36xf32, #tpu.memory_space<smem>>
    %47 = vector.broadcast %46 : f32 to vector<14x14xf32>
    %48 = arith.mulf %47, %33 : vector<14x14xf32>
    %49 = arith.addf %31, %48 : vector<14x14xf32>
    %c0_9 = arith.constant 0 : index
    %c1_10 = arith.constant 1 : index
    %c0_11 = arith.constant 0 : index
    %50 = vector.load %arg2[%c0_9, %c1_10, %c0_11] : memref<1x16x16xf32, #tpu.memory_space<vmem>>, vector<1x14x14xf32>
    %51 = vector.shape_cast %50 : vector<1x14x14xf32> to vector<14x14xf32>
    %c3 = arith.constant 3 : index
    %52 = memref.load %arg1[%c3] : memref<36xf32, #tpu.memory_space<smem>>
    %53 = vector.broadcast %52 : f32 to vector<14x14xf32>
    %54 = arith.mulf %53, %51 : vector<14x14xf32>
    %55 = arith.addf %37, %54 : vector<14x14xf32>
    %c12 = arith.constant 12 : index
    %56 = memref.load %arg1[%c12] : memref<36xf32, #tpu.memory_space<smem>>
    %57 = vector.broadcast %56 : f32 to vector<14x14xf32>
    %58 = arith.mulf %57, %51 : vector<14x14xf32>
    %59 = arith.addf %41, %58 : vector<14x14xf32>
    %c21 = arith.constant 21 : index
    %60 = memref.load %arg1[%c21] : memref<36xf32, #tpu.memory_space<smem>>
    %61 = vector.broadcast %60 : f32 to vector<14x14xf32>
    %62 = arith.mulf %61, %51 : vector<14x14xf32>
    %63 = arith.addf %45, %62 : vector<14x14xf32>
    %c30 = arith.constant 30 : index
    %64 = memref.load %arg1[%c30] : memref<36xf32, #tpu.memory_space<smem>>
    %65 = vector.broadcast %64 : f32 to vector<14x14xf32>
    %66 = arith.mulf %65, %51 : vector<14x14xf32>
    %67 = arith.addf %49, %66 : vector<14x14xf32>
    %c0_12 = arith.constant 0 : index
    %c1_13 = arith.constant 1 : index
    %c1_14 = arith.constant 1 : index
    %68 = vector.load %arg2[%c0_12, %c1_13, %c1_14] : memref<1x16x16xf32, #tpu.memory_space<vmem>>, vector<1x14x14xf32>
    %69 = vector.shape_cast %68 : vector<1x14x14xf32> to vector<14x14xf32>
    %c4 = arith.constant 4 : index
    %70 = memref.load %arg1[%c4] : memref<36xf32, #tpu.memory_space<smem>>
    %71 = vector.broadcast %70 : f32 to vector<14x14xf32>
    %72 = arith.mulf %71, %69 : vector<14x14xf32>
    %73 = arith.addf %55, %72 : vector<14x14xf32>
    %c13 = arith.constant 13 : index
    %74 = memref.load %arg1[%c13] : memref<36xf32, #tpu.memory_space<smem>>
    %75 = vector.broadcast %74 : f32 to vector<14x14xf32>
    %76 = arith.mulf %75, %69 : vector<14x14xf32>
    %77 = arith.addf %59, %76 : vector<14x14xf32>
    %c22 = arith.constant 22 : index
    %78 = memref.load %arg1[%c22] : memref<36xf32, #tpu.memory_space<smem>>
    %79 = vector.broadcast %78 : f32 to vector<14x14xf32>
    %80 = arith.mulf %79, %69 : vector<14x14xf32>
    %81 = arith.addf %63, %80 : vector<14x14xf32>
    %c31 = arith.constant 31 : index
    %82 = memref.load %arg1[%c31] : memref<36xf32, #tpu.memory_space<smem>>
    %83 = vector.broadcast %82 : f32 to vector<14x14xf32>
    %84 = arith.mulf %83, %69 : vector<14x14xf32>
    %85 = arith.addf %67, %84 : vector<14x14xf32>
    %c0_15 = arith.constant 0 : index
    %c1_16 = arith.constant 1 : index
    %c2_17 = arith.constant 2 : index
    %86 = vector.load %arg2[%c0_15, %c1_16, %c2_17] : memref<1x16x16xf32, #tpu.memory_space<vmem>>, vector<1x14x14xf32>
    %87 = vector.shape_cast %86 : vector<1x14x14xf32> to vector<14x14xf32>
    %c5 = arith.constant 5 : index
    %88 = memref.load %arg1[%c5] : memref<36xf32, #tpu.memory_space<smem>>
    %89 = vector.broadcast %88 : f32 to vector<14x14xf32>
    %90 = arith.mulf %89, %87 : vector<14x14xf32>
    %91 = arith.addf %73, %90 : vector<14x14xf32>
    %c14 = arith.constant 14 : index
    %92 = memref.load %arg1[%c14] : memref<36xf32, #tpu.memory_space<smem>>
    %93 = vector.broadcast %92 : f32 to vector<14x14xf32>
    %94 = arith.mulf %93, %87 : vector<14x14xf32>
    %95 = arith.addf %77, %94 : vector<14x14xf32>
    %c23 = arith.constant 23 : index
    %96 = memref.load %arg1[%c23] : memref<36xf32, #tpu.memory_space<smem>>
    %97 = vector.broadcast %96 : f32 to vector<14x14xf32>
    %98 = arith.mulf %97, %87 : vector<14x14xf32>
    %99 = arith.addf %81, %98 : vector<14x14xf32>
    %c32 = arith.constant 32 : index
    %100 = memref.load %arg1[%c32] : memref<36xf32, #tpu.memory_space<smem>>
    %101 = vector.broadcast %100 : f32 to vector<14x14xf32>
    %102 = arith.mulf %101, %87 : vector<14x14xf32>
    %103 = arith.addf %85, %102 : vector<14x14xf32>
    %c0_18 = arith.constant 0 : index
    %c2_19 = arith.constant 2 : index
    %c0_20 = arith.constant 0 : index
    %104 = vector.load %arg2[%c0_18, %c2_19, %c0_20] : memref<1x16x16xf32, #tpu.memory_space<vmem>>, vector<1x14x14xf32>
    %105 = vector.shape_cast %104 : vector<1x14x14xf32> to vector<14x14xf32>
    %c6 = arith.constant 6 : index
    %106 = memref.load %arg1[%c6] : memref<36xf32, #tpu.memory_space<smem>>
    %107 = vector.broadcast %106 : f32 to vector<14x14xf32>
    %108 = arith.mulf %107, %105 : vector<14x14xf32>
    %109 = arith.addf %91, %108 : vector<14x14xf32>
    %c15 = arith.constant 15 : index
    %110 = memref.load %arg1[%c15] : memref<36xf32, #tpu.memory_space<smem>>
    %111 = vector.broadcast %110 : f32 to vector<14x14xf32>
    %112 = arith.mulf %111, %105 : vector<14x14xf32>
    %113 = arith.addf %95, %112 : vector<14x14xf32>
    %c24 = arith.constant 24 : index
    %114 = memref.load %arg1[%c24] : memref<36xf32, #tpu.memory_space<smem>>
    %115 = vector.broadcast %114 : f32 to vector<14x14xf32>
    %116 = arith.mulf %115, %105 : vector<14x14xf32>
    %117 = arith.addf %99, %116 : vector<14x14xf32>
    %c33 = arith.constant 33 : index
    %118 = memref.load %arg1[%c33] : memref<36xf32, #tpu.memory_space<smem>>
    %119 = vector.broadcast %118 : f32 to vector<14x14xf32>
    %120 = arith.mulf %119, %105 : vector<14x14xf32>
    %121 = arith.addf %103, %120 : vector<14x14xf32>
    %c0_21 = arith.constant 0 : index
    %c2_22 = arith.constant 2 : index
    %c1_23 = arith.constant 1 : index
    %122 = vector.load %arg2[%c0_21, %c2_22, %c1_23] : memref<1x16x16xf32, #tpu.memory_space<vmem>>, vector<1x14x14xf32>
    %123 = vector.shape_cast %122 : vector<1x14x14xf32> to vector<14x14xf32>
    %c7 = arith.constant 7 : index
    %124 = memref.load %arg1[%c7] : memref<36xf32, #tpu.memory_space<smem>>
    %125 = vector.broadcast %124 : f32 to vector<14x14xf32>
    %126 = arith.mulf %125, %123 : vector<14x14xf32>
    %127 = arith.addf %109, %126 : vector<14x14xf32>
    %c16 = arith.constant 16 : index
    %128 = memref.load %arg1[%c16] : memref<36xf32, #tpu.memory_space<smem>>
    %129 = vector.broadcast %128 : f32 to vector<14x14xf32>
    %130 = arith.mulf %129, %123 : vector<14x14xf32>
    %131 = arith.addf %113, %130 : vector<14x14xf32>
    %c25 = arith.constant 25 : index
    %132 = memref.load %arg1[%c25] : memref<36xf32, #tpu.memory_space<smem>>
    %133 = vector.broadcast %132 : f32 to vector<14x14xf32>
    %134 = arith.mulf %133, %123 : vector<14x14xf32>
    %135 = arith.addf %117, %134 : vector<14x14xf32>
    %c34 = arith.constant 34 : index
    %136 = memref.load %arg1[%c34] : memref<36xf32, #tpu.memory_space<smem>>
    %137 = vector.broadcast %136 : f32 to vector<14x14xf32>
    %138 = arith.mulf %137, %123 : vector<14x14xf32>
    %139 = arith.addf %121, %138 : vector<14x14xf32>
    %c0_24 = arith.constant 0 : index
    %c2_25 = arith.constant 2 : index
    %c2_26 = arith.constant 2 : index
    %140 = vector.load %arg2[%c0_24, %c2_25, %c2_26] : memref<1x16x16xf32, #tpu.memory_space<vmem>>, vector<1x14x14xf32>
    %141 = vector.shape_cast %140 : vector<1x14x14xf32> to vector<14x14xf32>
    %c8 = arith.constant 8 : index
    %142 = memref.load %arg1[%c8] : memref<36xf32, #tpu.memory_space<smem>>
    %143 = vector.broadcast %142 : f32 to vector<14x14xf32>
    %144 = arith.mulf %143, %141 : vector<14x14xf32>
    %145 = arith.addf %127, %144 : vector<14x14xf32>
    %c17 = arith.constant 17 : index
    %146 = memref.load %arg1[%c17] : memref<36xf32, #tpu.memory_space<smem>>
    %147 = vector.broadcast %146 : f32 to vector<14x14xf32>
    %148 = arith.mulf %147, %141 : vector<14x14xf32>
    %149 = arith.addf %131, %148 : vector<14x14xf32>
    %c26 = arith.constant 26 : index
    %150 = memref.load %arg1[%c26] : memref<36xf32, #tpu.memory_space<smem>>
    %151 = vector.broadcast %150 : f32 to vector<14x14xf32>
    %152 = arith.mulf %151, %141 : vector<14x14xf32>
    %153 = arith.addf %135, %152 : vector<14x14xf32>
    %c35 = arith.constant 35 : index
    %154 = memref.load %arg1[%c35] : memref<36xf32, #tpu.memory_space<smem>>
    %155 = vector.broadcast %154 : f32 to vector<14x14xf32>
    %156 = arith.mulf %155, %141 : vector<14x14xf32>
    %157 = arith.addf %139, %156 : vector<14x14xf32>
    %c0_27 = arith.constant 0 : index
    %c0_28 = arith.constant 0 : index
    %c0_29 = arith.constant 0 : index
    %c0_30 = arith.constant 0 : index
    %158 = vector.load %arg3[%c0_27, %c0_28, %c0_29, %c0_30] : memref<1x4x14x14xf32, #tpu.memory_space<vmem>>, vector<1x1x14x14xf32>
    %159 = vector.shape_cast %158 : vector<1x1x14x14xf32> to vector<14x14xf32>
    %160 = vector.shape_cast %145 : vector<14x14xf32> to vector<1x1x14x14xf32>
    tpu.vector_store %arg3[%c0_27, %c0_28, %c0_29, %c0_30], %160 {strides = array<i32>} : memref<1x4x14x14xf32, #tpu.memory_space<vmem>>, vector<1x1x14x14xf32>,
    %c0_31 = arith.constant 0 : index
    %c1_32 = arith.constant 1 : index
    %c0_33 = arith.constant 0 : index
    %c0_34 = arith.constant 0 : index
    %161 = vector.load %arg3[%c0_31, %c1_32, %c0_33, %c0_34] : memref<1x4x14x14xf32, #tpu.memory_space<vmem>>, vector<1x1x14x14xf32>
    %162 = vector.shape_cast %161 : vector<1x1x14x14xf32> to vector<14x14xf32>
    %163 = vector.shape_cast %149 : vector<14x14xf32> to vector<1x1x14x14xf32>
    tpu.vector_store %arg3[%c0_31, %c1_32, %c0_33, %c0_34], %163 {strides = array<i32>} : memref<1x4x14x14xf32, #tpu.memory_space<vmem>>, vector<1x1x14x14xf32>,
    %c0_35 = arith.constant 0 : index
    %c2_36 = arith.constant 2 : index
    %c0_37 = arith.constant 0 : index
    %c0_38 = arith.constant 0 : index
    %164 = vector.load %arg3[%c0_35, %c2_36, %c0_37, %c0_38] : memref<1x4x14x14xf32, #tpu.memory_space<vmem>>, vector<1x1x14x14xf32>
    %165 = vector.shape_cast %164 : vector<1x1x14x14xf32> to vector<14x14xf32>
    %166 = vector.shape_cast %153 : vector<14x14xf32> to vector<1x1x14x14xf32>
    tpu.vector_store %arg3[%c0_35, %c2_36, %c0_37, %c0_38], %166 {strides = array<i32>} : memref<1x4x14x14xf32, #tpu.memory_space<vmem>>, vector<1x1x14x14xf32>,
    %c0_39 = arith.constant 0 : index
    %c3_40 = arith.constant 3 : index
    %c0_41 = arith.constant 0 : index
    %c0_42 = arith.constant 0 : index
    %167 = vector.load %arg3[%c0_39, %c3_40, %c0_41, %c0_42] : memref<1x4x14x14xf32, #tpu.memory_space<vmem>>, vector<1x1x14x14xf32>
    %168 = vector.shape_cast %167 : vector<1x1x14x14xf32> to vector<14x14xf32>
    %169 = vector.shape_cast %157 : vector<14x14xf32> to vector<1x1x14x14xf32>
    tpu.vector_store %arg3[%c0_39, %c3_40, %c0_41, %c0_42], %169 {strides = array<i32>} : memref<1x4x14x14xf32, #tpu.memory_space<vmem>>, vector<1x1x14x14xf32>,
    return
  }
  func.func @transform_0(%arg0: i32) -> i32 {
    %c0_i32 = arith.constant 0 : i32
    %c0_i32_0 = arith.constant 0 : i32
    return %c0_i32 : i32
  }
  func.func @transform_1(%arg0: i32) -> (i32, i32, i32) {
    %c0_i32 = arith.constant 0 : i32
    %c0_i32_0 = arith.constant 0 : i32
    %c0_i32_1 = arith.constant 0 : i32
    return %arg0, %c0_i32, %c0_i32_0 : i32, i32, i32
  }
  func.func @transform_2(%arg0: i32) -> (i32, i32, i32, i32) {
    %c0_i32 = arith.constant 0 : i32
    %c0_i32_0 = arith.constant 0 : i32
    %c0_i32_1 = arith.constant 0 : i32
    %c0_i32_2 = arith.constant 0 : i32
    return %arg0, %c0_i32, %c0_i32_0, %c0_i32_1 : i32, i32, i32, i32
  }
}

</mosaic_0001>

<bundles_post_ra>
// kernel: conv2d_forward.1
= control target key start
LH: loop header
LB: loop body
LE: loop exit
PB: predicated region body
PF: predicated region fallthrough
CT: control target
= control target key end

     0   :  { %7 = vsyncpa [#allocation3], 0  ;;  %s766_s9 = smov 0   ;;  %s965_s0 = inlined_call_operand.vmem [shape: f32[36], index: 0, kind: input, shape index: {}]   ;;  %s966_s1 = inlined_call_operand.vmem [shape: f32[2,16,16], index: 1, kind: input, shape index: {}]   ;;  %s967_s2 = inlined_call_operand.vmem [shape: f32[2,4,14,14], index: 2, kind: output, shape index: {}]  }
   0x1 LB: > { %s644_s10 = sadd.s32 4294967295, %s746_s9   ;;  %p646_p0 = scmp.ge.s32.totalorder %s746_s9, 1  ;;  %s746_s9 = sphi %s766_s9, %s13_s9  }
   0x2   : > { %p91_p1 = scmp.lt.s32.totalorder %s746_s9, 3  ;;  %s104_s13 = sshll.u32 %s965_s0, 4  ;;  %s105_s13 = int_to_ptr.vmem [resolvable:$true] %s104_s13 }
   0x3   : > { %p708_p3 = scmp.eq.s32.totalorder %s644_s10, 0  ;;  %s721_s15 = scalar_lea.vmem %s105_s13, 16 }
   0x4   : > { %p777_p2 = pnand %p646_p0, %p91_p1  ;;  %p722_p6 = scmp.ne.s32.totalorder %s105_s13, %s721_s15 }
   0x5   : > { %p729_p10 = scmp.lt.s32.totalorder %s105_s13, %s105_s13  ;;  %p730_p11 = scmp.lt.s32.totalorder %s721_s15, %s721_s15 }
   0x6   : > { %p704_p4 = pneg %p777_p2 }
   0x7   : > { %p731_p12 = por %p730_p11, %p729_p10 }
   0x8   : > { %p705_p5 = pnand %p708_p3, %p704_p4 }
   0xa   : > { %p723_p7 = pneg %p705_p5 }
   0xc   : > { %p724_p8 = pnand %p723_p7, %p722_p6 }
   0xe   : > { %p725_p9 = pneg %p724_p8 }
  0x10   : > { %p732_p13 = pnand %p731_p12, %p725_p9 }
  0x12   : > { %735 = shalt.err (!%p732_p13)
}
  0x13   : > { %s748_s16 = smov [#allocation2]   ;;  %125 = sbr.rel (%p777_p2) target bundleno = 247 (0xf7), region = 28 }
  0x14   : > { %707 = dma.vmem_to_smem (!%p705_p5), %s105_s13, 16, %s748_s16, [#allocation3]  }
  0x18   : > { %741 = dma.done.wait (%p708_p3), [#allocation3], 16  }
  0x19   : > { %743 = vsyncadd (%p708_p3), [#allocation3], 4294967280 }
  0x1a   : > { %131 = sfence }
  0x1b   : > { %p148_p0 = scmp.lt.s32.totalorder %s644_s10, 1  ;;  %s659_s17 = sld [smem:[#allocation2 + $0xa]]  ;;  %vm566_vm0 = vcmask 111616   ;;  %vm564_vm1 = vcmask 113664  }
  0x1c   : > { %s658_s18 = sld [smem:[#allocation2 + $0x1]]  ;;  %s749_s25 = smov 127  }
  0x1d   : > { %s970_s10 = smov (!%p148_p0, %s644_s10), 1  ;;  %s660_s20 = sld [smem:[#allocation2 + $0x13]] }
  0x1e   : > { %s698_s19 = sshll.u32 %s970_s10, 4  ;;  %s661_s24 = sld [smem:[#allocation2 + $0x1c]] }
  0x1f   : > { %s794_s23 = scalar_lea.vmem %s966_s1, %s698_s19  ;;  %s662_s26 = sld [smem:[#allocation2 + $0x2]] }
  0x20   : > { %v797_v0 = vld [vmem:[%s794_s23] sm:$0xff]  ;;  %v800_v1 = vld [vmem:[%s794_s23 + $0x8] sm:$0x3f]  ;;  %s663_s27 = sld [smem:[#allocation2 + $0xb]]  ;;  %s750_s30 = smov 126  }
  0x21   : > { %v191_v2 = vstv %s659_s17  ;;  %s664_s28 = sld [smem:[#allocation2 + $0x14]]  ;;  %v831_v25 = vld [vmem:[%s794_s23 + $0x9] sm:$0x3f]  ;;  %v836_v28 = vld [vmem:[%s794_s23 + $0x1] sm:$0xff] }
  0x22   : > { %v192_v3 = vmul.f32 %v191_v2, %v797_v0  ;;  %v177_v4 = vstv %s658_s18  ;;  %v193_v5 = vmul.f32 %v191_v2, %v800_v1  ;;  %s665_s29 = sld [smem:[#allocation2 + $0x1d]]  ;;  %v869_v51 = vld [vmem:[%s794_s23 + $0xa] sm:$0x3f]  ;;  %v874_v54 = vld [vmem:[%s794_s23 + $0x2] sm:$0xff] }
  0x23   : > { %v178_v6 = vmul.f32 %v177_v4, %v797_v0  ;;  %v205_v7 = vstv %s660_s20  ;;  %v179_v8 = vmul.f32 %v177_v4, %v800_v1  ;;  %s670_s3 = sld [smem:[#allocation2 + $0x4]] }
  0x24   : > { %196 = vrot.lane.b32.xlu1 %v192_v3, %s749_s25  ;;  %v207_v9 = vmul.f32 %v205_v7, %v800_v1  ;;  %v219_v10 = vstv %s661_s24  ;;  %v206_v11 = vmul.f32 %v205_v7, %v797_v0  ;;  %s671_s4 = sld [smem:[#allocation2 + $0xd]] }
  0x25   : > { %182 = vrot.lane.b32.xlu0 %v178_v6, %s749_s25  ;;  %v221_v12 = vmul.f32 %v219_v10, %v800_v1  ;;  %v233_v13 = vstv %s662_s26  ;;  %v220_v14 = vmul.f32 %v219_v10, %v797_v0  ;;  %s672_s5 = sld [smem:[#allocation2 + $0x16]] }
  0x26   : > { %v235_v15 = vmul.f32 %v233_v13, %v800_v1  ;;  %v247_v16 = vstv %s663_s27  ;;  %v234_v17 = vmul.f32 %v233_v13, %v797_v0  ;;  %s673_s6 = sld [smem:[#allocation2 + $0x1f]] }
  0x27   : > { %v249_v18 = vmul.f32 %v247_v16, %v800_v1  ;;  %v261_v19 = vstv %s664_s28  ;;  %v248_v20 = vmul.f32 %v247_v16, %v797_v0  ;;  %s674_s7 = sld [smem:[#allocation2 + $0x5]] }
  0x28   : > { %198 = vrot.lane.b32.xlu1 %v193_v5, %s749_s25  ;;  %v263_v21 = vmul.f32 %v261_v19, %v800_v1  ;;  %v275_v22 = vstv %s665_s29  ;;  %v262_v23 = vmul.f32 %v261_v19, %v797_v0  ;;  %s675_s8 = sld [smem:[#allocation2 + $0xe]] }
  0x29   : > { %184 = vrot.lane.b32.xlu0 %v179_v8, %s749_s25  ;;  %v277_v24 = vmul.f32 %v275_v22, %v800_v1  ;;  %v315_v26 = vstv %s670_s3  ;;  %v276_v27 = vmul.f32 %v275_v22, %v797_v0  ;;  %s676_s11 = sld [smem:[#allocation2 + $0x17]] }
  0x2a   : > { %v317_v29 = vmul.f32 %v315_v26, %v831_v25  ;;  %v329_v30 = vstv %s671_s4  ;;  %v316_v31 = vmul.f32 %v315_v26, %v836_v28  ;;  %s677_s12 = sld [smem:[#allocation2 + $0x20]] }
  0x2b   : > { %v331_v32 = vmul.f32 %v329_v30, %v831_v25  ;;  %v343_v33 = vstv %s672_s5  ;;  %v330_v34 = vmul.f32 %v329_v30, %v836_v28  ;;  %s682_s13 = sld [smem:[#allocation2 + $0x7]]  ;;  %s699_s5 = sshll.u32 %s970_s10, 6 }
  0x2c   : > { %212 = vrot.lane.b32.xlu1 %v207_v9, %s749_s25  ;;  %v345_v35 = vmul.f32 %v343_v33, %v831_v25  ;;  %v357_v36 = vstv %s673_s6  ;;  %v344_v37 = vmul.f32 %v343_v33, %v836_v28  ;;  %s683_s14 = sld [smem:[#allocation2 + $0x10]] }
  0x2d   : > { %210 = vrot.lane.b32.xlu0 %v206_v11, %s749_s25  ;;  %v359_v38 = vmul.f32 %v357_v36, %v831_v25  ;;  %v371_v39 = vstv %s674_s7  ;;  %v358_v40 = vmul.f32 %v357_v36, %v836_v28  ;;  %s684_s15 = sld [smem:[#allocation2 + $0x19]] }
  0x2e   : > { %v373_v41 = vmul.f32 %v371_v39, %v831_v25  ;;  %v385_v42 = vstv %s675_s8  ;;  %v372_v43 = vmul.f32 %v371_v39, %v836_v28  ;;  %s685_s16 = sld [smem:[#allocation2 + $0x22]]  ;;  %s944_s8 = scalar_lea.vmem %s967_s2, %s699_s5 }
  0x2f   : > { %v387_v44 = vmul.f32 %v385_v42, %v831_v25  ;;  %v399_v45 = vstv %s676_s11  ;;  %v386_v46 = vmul.f32 %v385_v42, %v836_v28  ;;  %s686_s17 = sld [smem:[#allocation2 + $0x8]] }
  0x30   : > { %226 = vrot.lane.b32.xlu1 %v221_v12, %s749_s25  ;;  %v401_v47 = vmul.f32 %v399_v45, %v831_v25  ;;  %v413_v48 = vstv %s677_s12  ;;  %v400_v49 = vmul.f32 %v399_v45, %v836_v28  ;;  %s687_s18 = sld [smem:[#allocation2 + $0x11]] }
  0x31   : > { %224 = vrot.lane.b32.xlu0 %v220_v14, %s749_s25  ;;  %v415_v50 = vmul.f32 %v413_v48, %v831_v25  ;;  %v453_v52 = vstv %s682_s13  ;;  %v414_v53 = vmul.f32 %v413_v48, %v836_v28  ;;  %s688_s19 = sld [smem:[#allocation2 + $0x1a]] }
  0x32   : > { %v455_v55 = vmul.f32 %v453_v52, %v869_v51  ;;  %v467_v56 = vstv %s683_s14  ;;  %v454_v57 = vmul.f32 %v453_v52, %v874_v54  ;;  %s689_s20 = sld [smem:[#allocation2 + $0x23]] }
  0x33   : > { %v469_v58 = vmul.f32 %v467_v56, %v869_v51  ;;  %v481_v59 = vstv %s684_s15  ;;  %v468_v60 = vmul.f32 %v467_v56, %v874_v54  ;;  %s655_s21 = sld [smem:[#allocation2 + $0x9]] }
  0x34   : > { %240 = vrot.lane.b32.xlu1 %v235_v15, %s750_s30  ;;  %v483_v61 = vmul.f32 %v481_v59, %v869_v51  ;;  %v495_v62 = vstv %s685_s16  ;;  %v482_v63 = vmul.f32 %v481_v59, %v874_v54  ;;  %s160_s22 = sld [smem:[#allocation2]] }
  0x35   : > { %238 = vrot.lane.b32.xlu0 %v234_v17, %s750_s30  ;;  %v497_v2 = vmul.f32 %v495_v62, %v869_v51  ;;  %v509_v3 = vstv %s686_s17  ;;  %v496_v4 = vmul.f32 %v495_v62, %v874_v54  ;;  %s656_s23 = sld [smem:[#allocation2 + $0x12]] }
  0x36   : > { %v511_v5 = vmul.f32 %v509_v3, %v869_v51  ;;  %v523_v6 = vstv %s687_s18  ;;  %v510_v7 = vmul.f32 %v509_v3, %v874_v54  ;;  %s657_s24 = sld [smem:[#allocation2 + $0x1b]] }
  0x37   : > { %v525_v8 = vmul.f32 %v523_v6, %v869_v51  ;;  %v537_v9 = vstv %s688_s19  ;;  %v524_v10 = vmul.f32 %v523_v6, %v874_v54  ;;  %s667_s26 = sld [smem:[#allocation2 + $0xc]] }
  0x38   : > { %254 = vrot.lane.b32.xlu1 %v249_v18, %s750_s30  ;;  %v539_v11 = vmul.f32 %v537_v9, %v869_v51  ;;  %v551_v12 = vstv %s689_s20  ;;  %v538_v13 = vmul.f32 %v537_v9, %v874_v54  ;;  %s668_s27 = sld [smem:[#allocation2 + $0x15]] }
  0x39   : > { %252 = vrot.lane.b32.xlu0 %v248_v20, %s750_s30  ;;  %v553_v14 = vmul.f32 %v551_v12, %v869_v51  ;;  %v552_v15 = vmul.f32 %v551_v12, %v874_v54  ;;  %v165_v16 = vstv %s655_s21  ;;  %s669_s28 = sld [smem:[#allocation2 + $0x1e]] }
  0x3a   : > { %v161_v17 = vstv %s160_s22  ;;  %v166_v18 = vmul.f32 %v165_v16, %v797_v0  ;;  %v167_v22 = vmul.f32 %v165_v16, %v800_v1  ;;  %s678_s29 = sld [smem:[#allocation2 + $0x6]] }
  0x3b   : > { %v162_v19 = vmul.f32 %v161_v17, %v797_v0  ;;  %s926_s3 = sld [smem:[#allocation2 + $0x18]] }
  0x3c   : > { %268 = vrot.lane.b32.xlu1 %v263_v21, %s750_s30  ;;  %s929_s4 = sld [smem:[#allocation2 + $0x21]] }
  0x3d   : > { %266 = vrot.lane.b32.xlu0 %v262_v23, %s750_s30 }
  0x40   : > { %282 = vrot.lane.b32.xlu1 %v277_v24, %s750_s30  ;;  %v169_v24 = vstv %s656_s23 }
  0x41   : > { %280 = vrot.lane.b32.xlu0 %v276_v27, %s750_s30  ;;  %v171_v30 = vmul.f32 %v169_v24, %v800_v1  ;;  %v170_v33 = vmul.f32 %v169_v24, %v797_v0 }
  0x44   : > { %322 = vrot.lane.b32.xlu1 %v317_v29, %s749_s25 }
  0x45   : > { %320 = vrot.lane.b32.xlu0 %v316_v31, %s749_s25 }
  0x48   : > { %336 = vrot.lane.b32.xlu1 %v331_v32, %s749_s25  ;;  %v173_v32 = vstv %s657_s24 }
  0x49   : > { %334 = vrot.lane.b32.xlu0 %v330_v34, %s749_s25  ;;  %v175_v36 = vmul.f32 %v173_v32, %v800_v1 }
  0x4c   : > { %350 = vrot.lane.b32.xlu1 %v345_v35, %s749_s25 }
  0x4d   : > { %348 = vrot.lane.b32.xlu0 %v344_v37, %s749_s25 }
  0x50   : > { %364 = vrot.lane.b32.xlu1 %v359_v38, %s749_s25  ;;  %v163_v38 = vmul.f32 %v161_v17, %v800_v1 }
  0x51   : > { %362 = vrot.lane.b32.xlu0 %v358_v40, %s749_s25  ;;  %v174_v40 = vmul.f32 %v173_v32, %v797_v0 }
  0x54   : > { %378 = vrot.lane.b32.xlu1 %v373_v41, %s750_s30 }
  0x55   : > { %376 = vrot.lane.b32.xlu0 %v372_v43, %s750_s30 }
  0x58   : > { %392 = vrot.lane.b32.xlu1 %v387_v44, %s750_s30 }
  0x59   : > { %390 = vrot.lane.b32.xlu0 %v386_v46, %s750_s30 }
  0x5c   : > { %406 = vrot.lane.b32.xlu1 %v401_v47, %s750_s30 }
  0x5d   : > { %404 = vrot.lane.b32.xlu0 %v400_v49, %s750_s30  ;;  %v297_v49 = vstv %s667_s26 }
  0x5e   : > { %v299_v0 = vmul.f32 %v297_v49, %v831_v25 }
  0x60   : > { %420 = vrot.lane.b32.xlu1 %v415_v50, %s750_s30 }
  0x61   : > { %418 = vrot.lane.b32.xlu0 %v414_v53, %s750_s30 }
  0x64   : > { %460 = vrot.lane.b32.xlu1 %v455_v55, %s749_s25 }
  0x65   : > { %458 = vrot.lane.b32.xlu0 %v454_v57, %s749_s25  ;;  %v303_v57 = vstv %s668_s27 }
  0x68   : > { %474 = vrot.lane.b32.xlu1 %v469_v58, %s749_s25 }
  0x69   : > { %472 = vrot.lane.b32.xlu0 %v468_v60, %s749_s25  ;;  %v298_v60 = vmul.f32 %v297_v49, %v836_v28 }
  0x6c   : > { %488 = vrot.lane.b32.xlu1 %v483_v61, %s749_s25 }
  0x6d   : > { %486 = vrot.lane.b32.xlu0 %v482_v63, %s749_s25 }
  0x70   : > { %502 = vrot.lane.b32.xlu1 %v497_v2, %s749_s25  ;;  %v305_v2 = vmul.f32 %v303_v57, %v831_v25 }
  0x71   : > { %500 = vrot.lane.b32.xlu0 %v496_v4, %s749_s25  ;;  %s666_s25 = sld [smem:[#allocation2 + $0x3]]  ;;  %v309_v4 = vstv %s669_s28 }
  0x74   : > { %516 = vrot.lane.b32.xlu1 %v511_v5, %s750_s30 }
  0x75   : > { %514 = vrot.lane.b32.xlu0 %v510_v7, %s750_s30  ;;  %v304_v7 = vmul.f32 %v303_v57, %v836_v28 }
  0x77   : > { %v291_v42 = vstv %s666_s25 }
  0x78   : > { %530 = vrot.lane.b32.xlu1 %v525_v8, %s750_s30  ;;  %v293_v47 = vmul.f32 %v291_v42, %v831_v25  ;;  %v292_v52 = vmul.f32 %v291_v42, %v836_v28  ;;  %v441_v42 = vstv %s926_s3 }
  0x79   : > { %528 = vrot.lane.b32.xlu0 %v524_v10, %s750_s30  ;;  %v442_v57 = vmul.f32 %v441_v42, %v874_v54 }
  0x7c   : > { %544 = vrot.lane.b32.xlu1 %v539_v11, %s750_s30  ;;  %v311_v11 = vmul.f32 %v309_v4, %v831_v25 }
  0x7d   : > { %542 = vrot.lane.b32.xlu0 %v538_v13, %s750_s30 }
  0x80   : > { %558 = vrot.lane.b32.xlu1 %v553_v14, %s750_s30 }
  0x81   : > { %556 = vrot.lane.b32.xlu0 %v552_v15, %s750_s30  ;;  %v310_v15 = vmul.f32 %v309_v4, %v836_v28  ;;  %s679_s30 = sld [smem:[#allocation2 + $0xf]] }
  0x87   : > { %v435_v32 = vstv %s679_s30 }
  0x96   : > { %v197_v20 = vpop.permute.xlu1 %196 }
  0x97   : > { %v202_v21 = vadd.f32 %v197_v20, %v166_v18  ;;  %v183_v23 = vpop.permute.xlu0 %182 }
  0x98   : > { %v188_v26 = vadd.f32 %v183_v23, %v162_v19 }
  0x9a   : > { %v199_v27 = vpop.permute.xlu1 %198 }
  0x9b   : > { %v203_v29 = vadd.f32 %v199_v27, %v167_v22  ;;  %v185_v31 = vpop.permute.xlu0 %184 }
  0x9c   : > { %v189_v45 = vadd.f32 %v185_v31, %v163_v38 }
  0x9e   : > { %v213_v34 = vpop.permute.xlu1 %212 }
  0x9f   : > { %v217_v35 = vadd.f32 %v213_v34, %v171_v30  ;;  %v211_v37 = vpop.permute.xlu0 %210 }
  0xa0   : > { %v216_v39 = vadd.f32 %v211_v37, %v170_v33 }
  0xa2   : > { %v227_v41 = vpop.permute.xlu1 %226 }
  0xa3   : > { %v231_v43 = vadd.f32 %v227_v41, %v175_v36  ;;  %v225_v44 = vpop.permute.xlu0 %224 }
  0xa4   : > { %v230_v46 = vadd.f32 %v225_v44, %v174_v40  ;;  %v437_v40 = vmul.f32 %v435_v32, %v869_v51 }
  0xa6   : > { %v241_v48 = vpop.permute.xlu1 %240 }
  0xa7   : > { %v245_v50 = vadd.f32 %v241_v48, %v189_v45  ;;  %v239_v53 = vpop.permute.xlu0 %238 }
  0xa8   : > { %v244_v1 = vadd.f32 %v239_v53, %v188_v26 }
  0xa9   : > { %v295_v55 = vadd.f32 %v293_v47, %v245_v50 }
  0xaa   : > { %v255_v56 = vpop.permute.xlu1 %254  ;;  %v294_v59 = vadd.f32 %v292_v52, %v244_v1  ;;  %v443_v52 = vmul.f32 %v441_v42, %v869_v51  ;;  %v447_v1 = vstv %s929_s4 }
  0xab   : > { %v259_v58 = vadd.f32 %v255_v56, %v203_v29  ;;  %v253_v61 = vpop.permute.xlu0 %252  ;;  %v429_v29 = vstv %s678_s29 }
  0xac   : > { %v258_v62 = vadd.f32 %v253_v61, %v202_v21  ;;  %v431_v28 = vmul.f32 %v429_v29, %v869_v51 }
  0xad   : > { %v301_v63 = vadd.f32 %v299_v0, %v259_v58 }
  0xae   : > { %v269_v3 = vpop.permute.xlu1 %268  ;;  %v300_v6 = vadd.f32 %v298_v60, %v258_v62  ;;  %v449_v62 = vmul.f32 %v447_v1, %v869_v51 }
  0xaf   : > { %v273_v5 = vadd.f32 %v269_v3, %v217_v35  ;;  %v267_v8 = vpop.permute.xlu0 %266  ;;  %v430_v35 = vmul.f32 %v429_v29, %v874_v54 }
  0xb0   : > { %v272_v9 = vadd.f32 %v267_v8, %v216_v39 }
  0xb1   : > { %v307_v10 = vadd.f32 %v305_v2, %v273_v5  ;;  %v448_v5 = vmul.f32 %v447_v1, %v874_v54 }
  0xb2   : > { %v283_v12 = vpop.permute.xlu1 %282  ;;  %v306_v14 = vadd.f32 %v304_v7, %v272_v9 }
  0xb3   : > { %v287_v13 = vadd.f32 %v283_v12, %v231_v43  ;;  %v281_v16 = vpop.permute.xlu0 %280 }
  0xb4   : > { %v286_v17 = vadd.f32 %v281_v16, %v230_v46  ;;  %v436_v46 = vmul.f32 %v435_v32, %v874_v54 }
  0xb5   : > { %v313_v18 = vadd.f32 %v311_v11, %v287_v13 }
  0xb6   : > { %v323_v19 = vpop.permute.xlu1 %322  ;;  %v312_v20 = vadd.f32 %v310_v15, %v286_v17 }
  0xb7   : > { %v321_v21 = vpop.permute.xlu0 %320  ;;  %v327_v30 = vadd.f32 %v323_v19, %v295_v55 }
  0xb8   : > { %v326_v33 = vadd.f32 %v321_v21, %v294_v59 }
  0xba   : > { %v337_v22 = vpop.permute.xlu1 %336 }
  0xbb   : > { %v335_v23 = vpop.permute.xlu0 %334  ;;  %v341_v37 = vadd.f32 %v337_v22, %v301_v63 }
  0xbc   : > { %v340_v43 = vadd.f32 %v335_v23, %v300_v6 }
  0xbe   : > { %v351_v24 = vpop.permute.xlu1 %350 }
  0xbf   : > { %v349_v26 = vpop.permute.xlu0 %348  ;;  %v355_v48 = vadd.f32 %v351_v24, %v307_v10 }
  0xc0   : > { %v354_v55 = vadd.f32 %v349_v26, %v306_v14 }
  0xc2   : > { %v365_v27 = vpop.permute.xlu1 %364 }
  0xc3   : > { %v363_v25 = vpop.permute.xlu0 %362  ;;  %v369_v59 = vadd.f32 %v365_v27, %v313_v18 }
  0xc4   : > { %v368_v2 = vadd.f32 %v363_v25, %v312_v20 }
  0xc6   : > { %v379_v31 = vpop.permute.xlu1 %378 }
  0xc7   : > { %v383_v34 = vadd.f32 %v379_v31, %v327_v30  ;;  %v377_v36 = vpop.permute.xlu0 %376 }
  0xc8   : > { %v382_v38 = vadd.f32 %v377_v36, %v326_v33 }
  0xc9   : > { %v433_v39 = vadd.f32 %v431_v28, %v383_v34 }
  0xca   : > { %v393_v41 = vpop.permute.xlu1 %392  ;;  %v432_v45 = vadd.f32 %v430_v35, %v382_v38 }
  0xcb   : > { %v397_v44 = vadd.f32 %v393_v41, %v341_v37  ;;  %v391_v47 = vpop.permute.xlu0 %390 }
  0xcc   : > { %v396_v49 = vadd.f32 %v391_v47, %v340_v43 }
  0xcd   : > { %v439_v50 = vadd.f32 %v437_v40, %v397_v44 }
  0xce   : > { %v407_v53 = vpop.permute.xlu1 %406  ;;  %v438_v56 = vadd.f32 %v436_v46, %v396_v49 }
  0xcf   : > { %v411_v0 = vadd.f32 %v407_v53, %v355_v48  ;;  %v405_v58 = vpop.permute.xlu0 %404 }
  0xd0   : > { %v410_v60 = vadd.f32 %v405_v58, %v354_v55 }
  0xd1   : > { %v445_v61 = vadd.f32 %v443_v52, %v411_v0 }
  0xd2   : > { %v421_v63 = vpop.permute.xlu1 %420  ;;  %v444_v4 = vadd.f32 %v442_v57, %v410_v60 }
  0xd3   : > { %v425_v3 = vadd.f32 %v421_v63, %v369_v59  ;;  %v419_v6 = vpop.permute.xlu0 %418 }
  0xd4   : > { %v424_v7 = vadd.f32 %v419_v6, %v368_v2 }
  0xd5   : > { %v451_v8 = vadd.f32 %v449_v62, %v425_v3 }
  0xd6   : > { %v461_v9 = vpop.permute.xlu1 %460  ;;  %v450_v10 = vadd.f32 %v448_v5, %v424_v7 }
  0xd7   : > { %v459_v11 = vpop.permute.xlu0 %458  ;;  %v465_v17 = vadd.f32 %v461_v9, %v433_v39 }
  0xd8   : > { %v464_v18 = vadd.f32 %v459_v11, %v432_v45 }
  0xda   : > { %v475_v12 = vpop.permute.xlu1 %474 }
  0xdb   : > { %v473_v13 = vpop.permute.xlu0 %472  ;;  %v479_v21 = vadd.f32 %v475_v12, %v439_v50 }
  0xdc   : > { %v478_v24 = vadd.f32 %v473_v13, %v438_v56 }
  0xde   : > { %v489_v14 = vpop.permute.xlu1 %488 }
  0xdf   : > { %v487_v15 = vpop.permute.xlu0 %486  ;;  %v493_v29 = vadd.f32 %v489_v14, %v445_v61 }
  0xe0   : > { %v492_v28 = vadd.f32 %v487_v15, %v444_v4 }
  0xe2   : > { %v503_v16 = vpop.permute.xlu1 %502 }
  0xe3   : > { %v501_v51 = vpop.permute.xlu0 %500  ;;  %v507_v33 = vadd.f32 %v503_v16, %v451_v8 }
  0xe4   : > { %v506_v36 = vadd.f32 %v501_v51, %v450_v10 }
  0xe6   : > { %v517_v54 = vpop.permute.xlu1 %516 }
  0xe7   : > { %v521_v19 = vadd.f32 %v517_v54, %v465_v17  ;;  %v515_v20 = vpop.permute.xlu0 %514 }
  0xe8   : > { %v520_v22 = vadd.f32 %v515_v20, %v464_v18 }
  0xe9   : > { %567 = vst.msk [vmem:[%s944_s8 + $0x8] sm:$0x3f] %vm566_vm0, %v521_v19 }
  0xea   : > { %v531_v23 = vpop.permute.xlu1 %530  ;;  %565 = vst.msk [vmem:[%s944_s8] sm:$0xff] %vm564_vm1, %v520_v22 }
  0xeb   : > { %v535_v26 = vadd.f32 %v531_v23, %v479_v21  ;;  %v529_v27 = vpop.permute.xlu0 %528 }
  0xec   : > { %v534_v25 = vadd.f32 %v529_v27, %v478_v24 }
  0xed   : > { %691 = vst.msk [vmem:[%s944_s8 + $0x18] sm:$0x3f] %vm566_vm0, %v535_v26 }
  0xee   : > { %v545_v30 = vpop.permute.xlu1 %544  ;;  %690 = vst.msk [vmem:[%s944_s8 + $0x10] sm:$0xff] %vm564_vm1, %v534_v25 }
  0xef   : > { %v549_v31 = vadd.f32 %v545_v30, %v493_v29  ;;  %v543_v32 = vpop.permute.xlu0 %542 }
  0xf0   : > { %v548_v34 = vadd.f32 %v543_v32, %v492_v28 }
  0xf1   : > { %693 = vst.msk [vmem:[%s944_s8 + $0x28] sm:$0x3f] %vm566_vm0, %v549_v31 }
  0xf2   : > { %v559_v35 = vpop.permute.xlu1 %558  ;;  %692 = vst.msk [vmem:[%s944_s8 + $0x20] sm:$0xff] %vm564_vm1, %v548_v34 }
  0xf3   : > { %v563_v37 = vadd.f32 %v559_v35, %v507_v33  ;;  %v557_v38 = vpop.permute.xlu0 %556 }
  0xf4   : > { %v562_v39 = vadd.f32 %v557_v38, %v506_v36 }
  0xf5   : > { %695 = vst.msk [vmem:[%s944_s8 + $0x38] sm:$0x3f] %vm566_vm0, %v563_v37 }
  0xf6   : > { %694 = vst.msk [vmem:[%s944_s8 + $0x30] sm:$0xff] %vm564_vm1, %v562_v39 }
  0xf7 PF: > { %s13_s9 = sadd.s32 1, %s746_s9  }
  0xf8   : > { %p10_p1 = scmp.ge.s32.totalorder %s13_s9, 4  }
  0xfa   :  { %12 = sbr.rel (!%p10_p1) target bundleno = 1 (0x1), region = 66 }
  0xff   :  { %598 = vsyncpa [#allocation3], 1 }
 0x100   :  { %600 = vsyncpa [#allocation3 + $0x1], 1 }

</bundles_post_ra>
